<compile_context>
chip_gen: v7x
topology: tpu7x:2x2x1
jax: 0.10.0
libtpu: 0.0.40
codegen_flags: <defaults>
</compile_context>

<pallas_src>
import math

import jax
import jax.numpy as jnp
from jax.experimental import pallas as pl
from jax.experimental.pallas import tpu as pltpu

# ---------------- synthetic config ----------------
B = 2                     # batch
N = 8                     # max_num_particles
BN = B * N
DIM_FEAT_CONT = 3         # data.dim_features_continuous
DIM_FEAT_DISC = 1         # data.dim_features_discrete
DIM_CTX_CONT = 4          # data.dim_context_continuous
DIM_CTX_DISC = 1          # data.dim_context_discrete
VOCAB = 6                 # data.vocab_size_features
VOCAB_CTX = 5             # data.vocab_size_context
DIM_EMB_TIME = 16         # encoder.dim_emb_time (even -> no zero-pad branch)
DIM_EMB_FEAT_CONT = 16
DIM_EMB_FEAT_DISC = 16
DIM_EMB_CTX_CONT = 16
DIM_EMB_CTX_DISC = 16
MAX_PERIOD = 10000.0

DIM_H = DIM_EMB_TIME + DIM_EMB_FEAT_CONT + DIM_EMB_FEAT_DISC      # 48
DIM_CTX = DIM_EMB_TIME + DIM_EMB_CTX_CONT + DIM_EMB_CTX_DISC      # 48

LANES = 128               # lane-dense output slab width
CTX_ROWS = 8              # context rows padded B=2 -> 8 (one f32 sublane tile)
OUT_ROWS = BN + CTX_ROWS  # single merged output slab

# lane placement of the segments inside the 128-lane output slab
L_TIME = 0
L_CONT_F = DIM_EMB_TIME                       # 16
L_DISC_F = L_CONT_F + DIM_EMB_FEAT_CONT       # 32
L_CONT_C = DIM_EMB_TIME                       # 16
L_DISC_C = L_CONT_C + DIM_EMB_CTX_CONT        # 32

# parameter-slab row layout
R_FREQS = 0
R_PHASE = 1
R_BIAS_F = 2
R_WC = 3
R_E = R_WC + DIM_FEAT_CONT                    # 6
R_BIAS_C = R_E + VOCAB                        # 12
R_WCC = R_BIAS_C + 1                          # 13
R_EC = R_WCC + DIM_CTX_CONT                   # 17
PRM_ROWS = R_EC + VOCAB_CTX                   # 22
PRM_ROWS_PAD = ((PRM_ROWS + 7) // 8) * 8      # 24

# packed per-particle slab columns: [x(3) | k(1) | mask(1) | pad]
C_X = 0
C_K = DIM_FEAT_CONT
C_MASK = C_K + DIM_FEAT_DISC
PP_COLS = 8
# packed per-batch slab columns: [t(1) | cc(4) | cd(1) | pad]
C_T = 0
C_CC = 1
C_CD = C_CC + DIM_CTX_CONT
PB_COLS = 8


def pack_params(params):
    """Lane-place all weights, sinusoid freqs and the cos/sin phase into ONE
    (PRM_ROWS_PAD, 128) f32 slab.  Called once at init (free layout plumbing);
    the kernel takes static row views of it."""
    half = DIM_EMB_TIME // 2
    freqs = jnp.exp(-math.log(MAX_PERIOD)
                    * jnp.arange(half, dtype=jnp.float32) / half)
    slab = jnp.zeros((PRM_ROWS_PAD, LANES), jnp.float32)
    # freqs duplicated over both halves of the time segment; phase = pi/2 in the
    # cos half -> sin(a + pi/2) = cos(a); lanes >= DIM_EMB_TIME stay exactly zero.
    slab = slab.at[R_FREQS, L_TIME:L_TIME + half].set(freqs)
    slab = slab.at[R_FREQS, L_TIME + half:L_TIME + DIM_EMB_TIME].set(freqs)
    slab = slab.at[R_PHASE, L_TIME:L_TIME + half].set(
        jnp.full((half,), math.pi / 2, jnp.float32))
    slab = slab.at[R_BIAS_F, L_CONT_F:L_CONT_F + DIM_EMB_FEAT_CONT].set(params['bc'][0])
    slab = slab.at[R_WC:R_WC + DIM_FEAT_CONT,
                   L_CONT_F:L_CONT_F + DIM_EMB_FEAT_CONT].set(params['Wc'])
    slab = slab.at[R_E:R_E + VOCAB,
                   L_DISC_F:L_DISC_F + DIM_EMB_FEAT_DISC].set(params['E'])
    slab = slab.at[R_BIAS_C, L_CONT_C:L_CONT_C + DIM_EMB_CTX_CONT].set(params['bcc'][0])
    slab = slab.at[R_WCC:R_WCC + DIM_CTX_CONT,
                   L_CONT_C:L_CONT_C + DIM_EMB_CTX_CONT].set(params['Wcc'])
    slab = slab.at[R_EC:R_EC + VOCAB_CTX,
                   L_DISC_C:L_DISC_C + DIM_EMB_CTX_DISC].set(params['Ec'])
    return slab


def _input_embeddings_kernel(pp_ref, pb_ref, prm_ref, out_ref):
    prm = prm_ref[...]          # (PRM_ROWS_PAD, 128)  lane-placed weights
    pb = pb_ref[...]            # (CTX_ROWS, 8)        [t | cc | cd | pad]
    pp = pp_ref[...]            # (BN, 8)              [x | k | mask | pad]

    # ---- sinusoidal time embedding, computed ONCE at CTX_ROWS rows with a single
    #      transcendental: sin(t*f + phase) == [cos(t*f) | sin(t*f) | 0 ...] ----
    t_col = pb[:, C_T:C_T + 1]                                       # (CTX_ROWS, 1)
    t_emb = jnp.sin(t_col * prm[R_FREQS:R_FREQS + 1, :]
                    + prm[R_PHASE:R_PHASE + 1, :])                   # (CTX_ROWS, 128)
    # TODO(synk): odd DIM_EMB_TIME zero-pad branch not needed for even-dim config.

    # ---- context rows: one full-128-lane accumulator; Linear as unrolled VPU
    #      broadcast-FMAs, Embedding as select-accumulates (no MXU, no lane concat) ----
    ctx = t_emb + jnp.broadcast_to(prm[R_BIAS_C:R_BIAS_C + 1, :], (CTX_ROWS, LANES))
    for c in range(DIM_CTX_CONT):
        ctx = ctx + pb[:, C_CC + c:C_CC + c + 1] * prm[R_WCC + c:R_WCC + c + 1, :]
    cd = pb[:, C_CD:C_CD + 1]
    for v in range(VOCAB_CTX):
        ctx = ctx + (cd == float(v)).astype(jnp.float32) * prm[R_EC + v:R_EC + v + 1, :]
    # TODO(synk): out-of-range discrete codes sum to an all-zero row here (a true
    # nn.Embedding gather would OOB); fine for well-formed inputs.

    # ---- particle feature rows: full-lane accumulator (time added per batch below) ----
    feat = jnp.broadcast_to(prm[R_BIAS_F:R_BIAS_F + 1, :], (BN, LANES))
    for c in range(DIM_FEAT_CONT):
        feat = feat + pp[:, C_X + c:C_X + c + 1] * prm[R_WC + c:R_WC + c + 1, :]
    kf = pp[:, C_K:C_K + 1]
    for v in range(VOCAB):
        feat = feat + (kf == float(v)).astype(jnp.float32) * prm[R_E + v:R_E + v + 1, :]
    m = pp[:, C_MASK:C_MASK + 1]

    # ---- single merged output slab: features rows [0, BN), context rows [BN, BN+8).
    #      The per-batch loop replicates t_emb over each batch's N particle rows
    #      (sublane broadcast) -- no (BN,·) time input, no extra transcendentals.
    #      Every store is a full-128-lane, 8-sublane-aligned unmasked store. ----
    for b in range(B):
        t_b = jnp.broadcast_to(t_emb[b:b + 1, :], (N, LANES))
        out_ref[b * N:(b + 1) * N, :] = (feat[b * N:(b + 1) * N, :] + t_b) \
            * m[b * N:(b + 1) * N, :]
    out_ref[BN:BN + CTX_ROWS, :] = ctx


@jax.jit
def input_embeddings(t, x, k, mask, context_continuous, context_discrete, prm_slab):
    """t (B,1) f32, x (B,N,Dc) f32, k (B,N,1) int32, mask (B,N,1) f32,
    context_continuous (B,Dcc) f32, context_discrete (B,1) int32,
    prm_slab = pack_params(params)."""
    # ---- operand coalescing: ONE per-particle slab + ONE per-batch slab ----
    pp = jnp.concatenate([
        x.reshape(BN, DIM_FEAT_CONT).astype(jnp.float32),
        k.reshape(BN, DIM_FEAT_DISC).astype(jnp.float32),   # small ints exact in f32
        mask.reshape(BN, 1).astype(jnp.float32),
        jnp.zeros((BN, PP_COLS - DIM_FEAT_CONT - DIM_FEAT_DISC - 1), jnp.float32),
    ], axis=1)                                                        # (BN, 8)
    pb_rows = jnp.concatenate([
        t.reshape(B, 1).astype(jnp.float32),
        context_continuous.reshape(B, DIM_CTX_CONT).astype(jnp.float32),
        context_discrete.reshape(B, DIM_CTX_DISC).astype(jnp.float32),
        jnp.zeros((B, PB_COLS - 1 - DIM_CTX_CONT - DIM_CTX_DISC), jnp.float32),
    ], axis=1)
    pb = jnp.zeros((CTX_ROWS, PB_COLS), jnp.float32).at[:B, :].set(pb_rows)  # (8, 8)

    vmem = pl.BlockSpec(memory_space=pltpu.MemorySpace.VMEM)
    cost = pl.CostEstimate(
        flops=2 * LANES * (BN * (DIM_FEAT_CONT + VOCAB + 2)
                           + CTX_ROWS * (DIM_CTX_CONT + VOCAB_CTX + 2)),
        transcendentals=CTX_ROWS * LANES,
        bytes_accessed=4 * (BN * PP_COLS + CTX_ROWS * PB_COLS
                            + PRM_ROWS_PAD * LANES + OUT_ROWS * LANES),
    )

    # TODO(synk): if B*N scales up, add a "parallel" grid over the BN rows (keep the
    # parameter slab resident via index_map -> (0, 0)) so v7x's 2 TensorCores are
    # used, size the row tile for v7x's 64 MiB VMEM, consider bf16 writeback on
    # v6e/v7x, and re-benchmark the 48->128 lane padding vs a masked writeback.
    slab = pl.pallas_call(
        _input_embeddings_kernel,
        out_shape=jax.ShapeDtypeStruct((OUT_ROWS, LANES), jnp.float32),
        in_specs=[vmem, vmem, vmem],
        out_specs=vmem,
        cost_estimate=cost,
    )(pp, pb, prm_slab)

    features = slab[:BN, :DIM_H].reshape(B, N, DIM_H)
    context = slab[BN:BN + B, :DIM_CTX]
    return features, context


def reference(t, x, k, mask, cc, cd, p):
    """Pure-JAX reference reproducing the PyTorch forward semantics."""
    half = DIM_EMB_TIME // 2
    freqs = jnp.exp(-math.log(MAX_PERIOD)
                    * jnp.arange(half, dtype=jnp.float32) / half)
    args = t.astype(jnp.float32) * freqs[None]                 # (B,1)->(B,half)
    t_emb = jnp.concatenate([jnp.cos(args), jnp.sin(args)], -1)
    cont = x @ p['Wc'] + p['bc'][0]
    disc = p['E'][k.reshape(B, N)]                              # (B, N, Ded)
    t_rep = jnp.broadcast_to(t_emb[:, None, :], (B, N, DIM_EMB_TIME))
    feats = jnp.concatenate([t_rep, cont, disc], -1) * mask
    cc_emb = cc @ p['Wcc'] + p['bcc'][0]
    cd_emb = p['Ec'][cd.reshape(B)]
    ctx = jnp.concatenate([t_emb, cc_emb, cd_emb], -1)
    return feats, ctx


if __name__ == "__main__":
    keys = jax.random.split(jax.random.PRNGKey(0), 12)

    # inputs
    t = jax.random.uniform(keys[0], (B, 1), jnp.float32)
    x = jax.random.normal(keys[1], (B, N, DIM_FEAT_CONT), jnp.float32)
    k = jax.random.randint(keys[2], (B, N, DIM_FEAT_DISC), 0, VOCAB, jnp.int32)
    mask = (jax.random.uniform(keys[3], (B, N, 1)) > 0.3).astype(jnp.float32)
    cc = jax.random.normal(keys[4], (B, DIM_CTX_CONT), jnp.float32)
    cd = jax.random.randint(keys[5], (B, DIM_CTX_DISC), 0, VOCAB_CTX, jnp.int32)

    # deterministic synthetic parameters (Linear weights stored as (in, out))
    params = {
        'Wc':  0.1 * jax.random.normal(keys[6],  (DIM_FEAT_CONT, DIM_EMB_FEAT_CONT), jnp.float32),
        'bc':  0.1 * jax.random.normal(keys[7],  (1, DIM_EMB_FEAT_CONT), jnp.float32),
        'E':   0.1 * jax.random.normal(keys[8],  (VOCAB, DIM_EMB_FEAT_DISC), jnp.float32),
        'Wcc': 0.1 * jax.random.normal(keys[9],  (DIM_CTX_CONT, DIM_EMB_CTX_CONT), jnp.float32),
        'bcc': 0.1 * jax.random.normal(keys[10], (1, DIM_EMB_CTX_CONT), jnp.float32),
        'Ec':  0.1 * jax.random.normal(keys[11], (VOCAB_CTX, DIM_EMB_CTX_DISC), jnp.float32),
    }

    prm_slab = jax.block_until_ready(pack_params(params))   # one-time init packing

    feats, ctx = input_embeddings(t, x, k, mask, cc, cd, prm_slab)
    feats = jax.block_until_ready(feats)
    ctx = jax.block_until_ready(ctx)

    ref_feats, ref_ctx = reference(t, x, k, mask, cc, cd, params)
    assert feats.shape == (B, N, DIM_H) and ctx.shape == (B, DIM_CTX)
    assert jnp.allclose(feats, ref_feats, atol=1e-5, rtol=1e-5)
    assert jnp.allclose(ctx, ref_ctx, atol=1e-5, rtol=1e-5)

    print("KERNEL_OK")
</pallas_src>

<mosaic_0001>
module attributes {stable_mosaic.version = 11 : i64} {
  func.func @_input_embeddings_kernel(%arg0: memref<16x8xf32, #tpu.memory_space<vmem>>, %arg1: memref<8x8xf32, #tpu.memory_space<vmem>>, %arg2: memref<24x128xf32, #tpu.memory_space<vmem>>, %arg3: memref<24x128xf32, #tpu.memory_space<vmem>>) attributes {dimension_semantics = [], scalar_prefetch = 0 : i64, scratch_operands = 0 : i64, tpu.core_type = #tpu.core_type<tc>} {
    %c0 = arith.constant 0 : index
    %c0_0 = arith.constant 0 : index
    %0 = vector.load %arg2[%c0, %c0_0] : memref<24x128xf32, #tpu.memory_space<vmem>>, vector<24x128xf32>
    %c0_1 = arith.constant 0 : index
    %c0_2 = arith.constant 0 : index
    %1 = vector.load %arg1[%c0_1, %c0_2] : memref<8x8xf32, #tpu.memory_space<vmem>>, vector<8x8xf32>
    %c0_3 = arith.constant 0 : index
    %c0_4 = arith.constant 0 : index
    %2 = vector.load %arg0[%c0_3, %c0_4] : memref<16x8xf32, #tpu.memory_space<vmem>>, vector<16x8xf32>
    %3 = vector.extract_strided_slice %1 {offsets = [0, 0], sizes = [8, 1], strides = [1, 1]} : vector<8x8xf32> to vector<8x1xf32>
    %4 = vector.extract_strided_slice %0 {offsets = [0, 0], sizes = [1, 128], strides = [1, 1]} : vector<24x128xf32> to vector<1x128xf32>
    %5 = vector.broadcast %3 : vector<8x1xf32> to vector<8x128xf32>
    %6 = vector.broadcast %4 : vector<1x128xf32> to vector<8x128xf32>
    %7 = arith.mulf %5, %6 : vector<8x128xf32>
    %8 = vector.extract_strided_slice %0 {offsets = [1, 0], sizes = [1, 128], strides = [1, 1]} : vector<24x128xf32> to vector<1x128xf32>
    %9 = vector.broadcast %8 : vector<1x128xf32> to vector<8x128xf32>
    %10 = arith.addf %7, %9 : vector<8x128xf32>
    %11 = math.sin %10 : vector<8x128xf32>
    %12 = vector.extract_strided_slice %0 {offsets = [12, 0], sizes = [1, 128], strides = [1, 1]} : vector<24x128xf32> to vector<1x128xf32>
    %13 = vector.shape_cast %12 : vector<1x128xf32> to vector<1x128xf32>
    %14 = vector.broadcast %13 : vector<1x128xf32> to vector<8x128xf32>
    %15 = arith.addf %11, %14 : vector<8x128xf32>
    %16 = vector.extract_strided_slice %1 {offsets = [0, 1], sizes = [8, 1], strides = [1, 1]} : vector<8x8xf32> to vector<8x1xf32>
    %17 = vector.extract_strided_slice %0 {offsets = [13, 0], sizes = [1, 128], strides = [1, 1]} : vector<24x128xf32> to vector<1x128xf32>
    %18 = vector.broadcast %16 : vector<8x1xf32> to vector<8x128xf32>
    %19 = vector.broadcast %17 : vector<1x128xf32> to vector<8x128xf32>
    %20 = arith.mulf %18, %19 : vector<8x128xf32>
    %21 = arith.addf %15, %20 : vector<8x128xf32>
    %22 = vector.extract_strided_slice %1 {offsets = [0, 2], sizes = [8, 1], strides = [1, 1]} : vector<8x8xf32> to vector<8x1xf32>
    %23 = vector.extract_strided_slice %0 {offsets = [14, 0], sizes = [1, 128], strides = [1, 1]} : vector<24x128xf32> to vector<1x128xf32>
    %24 = vector.broadcast %22 : vector<8x1xf32> to vector<8x128xf32>
    %25 = vector.broadcast %23 : vector<1x128xf32> to vector<8x128xf32>
    %26 = arith.mulf %24, %25 : vector<8x128xf32>
    %27 = arith.addf %21, %26 : vector<8x128xf32>
    %28 = vector.extract_strided_slice %1 {offsets = [0, 3], sizes = [8, 1], strides = [1, 1]} : vector<8x8xf32> to vector<8x1xf32>
    %29 = vector.extract_strided_slice %0 {offsets = [15, 0], sizes = [1, 128], strides = [1, 1]} : vector<24x128xf32> to vector<1x128xf32>
    %30 = vector.broadcast %28 : vector<8x1xf32> to vector<8x128xf32>
    %31 = vector.broadcast %29 : vector<1x128xf32> to vector<8x128xf32>
    %32 = arith.mulf %30, %31 : vector<8x128xf32>
    %33 = arith.addf %27, %32 : vector<8x128xf32>
    %34 = vector.extract_strided_slice %1 {offsets = [0, 4], sizes = [8, 1], strides = [1, 1]} : vector<8x8xf32> to vector<8x1xf32>
    %35 = vector.extract_strided_slice %0 {offsets = [16, 0], sizes = [1, 128], strides = [1, 1]} : vector<24x128xf32> to vector<1x128xf32>
    %36 = vector.broadcast %34 : vector<8x1xf32> to vector<8x128xf32>
    %37 = vector.broadcast %35 : vector<1x128xf32> to vector<8x128xf32>
    %38 = arith.mulf %36, %37 : vector<8x128xf32>
    %39 = arith.addf %33, %38 : vector<8x128xf32>
    %40 = vector.extract_strided_slice %1 {offsets = [0, 5], sizes = [8, 1], strides = [1, 1]} : vector<8x8xf32> to vector<8x1xf32>
    %cst = arith.constant 0.000000e+00 : f32
    %41 = vector.broadcast %cst : f32 to vector<8x1xf32>
    %42 = arith.cmpf oeq, %40, %41 : vector<8x1xf32>
    %43 = arith.extui %42 : vector<8x1xi1> to vector<8x1xi32>
    %44 = arith.sitofp %43 : vector<8x1xi32> to vector<8x1xf32>
    %45 = vector.extract_strided_slice %0 {offsets = [17, 0], sizes = [1, 128], strides = [1, 1]} : vector<24x128xf32> to vector<1x128xf32>
    %46 = vector.broadcast %44 : vector<8x1xf32> to vector<8x128xf32>
    %47 = vector.broadcast %45 : vector<1x128xf32> to vector<8x128xf32>
    %48 = arith.mulf %46, %47 : vector<8x128xf32>
    %49 = arith.addf %39, %48 : vector<8x128xf32>
    %cst_5 = arith.constant 1.000000e+00 : f32
    %50 = vector.broadcast %cst_5 : f32 to vector<8x1xf32>
    %51 = arith.cmpf oeq, %40, %50 : vector<8x1xf32>
    %52 = arith.extui %51 : vector<8x1xi1> to vector<8x1xi32>
    %53 = arith.sitofp %52 : vector<8x1xi32> to vector<8x1xf32>
    %54 = vector.extract_strided_slice %0 {offsets = [18, 0], sizes = [1, 128], strides = [1, 1]} : vector<24x128xf32> to vector<1x128xf32>
    %55 = vector.broadcast %53 : vector<8x1xf32> to vector<8x128xf32>
    %56 = vector.broadcast %54 : vector<1x128xf32> to vector<8x128xf32>
    %57 = arith.mulf %55, %56 : vector<8x128xf32>
    %58 = arith.addf %49, %57 : vector<8x128xf32>
    %cst_6 = arith.constant 2.000000e+00 : f32
    %59 = vector.broadcast %cst_6 : f32 to vector<8x1xf32>
    %60 = arith.cmpf oeq, %40, %59 : vector<8x1xf32>
    %61 = arith.extui %60 : vector<8x1xi1> to vector<8x1xi32>
    %62 = arith.sitofp %61 : vector<8x1xi32> to vector<8x1xf32>
    %63 = vector.extract_strided_slice %0 {offsets = [19, 0], sizes = [1, 128], strides = [1, 1]} : vector<24x128xf32> to vector<1x128xf32>
    %64 = vector.broadcast %62 : vector<8x1xf32> to vector<8x128xf32>
    %65 = vector.broadcast %63 : vector<1x128xf32> to vector<8x128xf32>
    %66 = arith.mulf %64, %65 : vector<8x128xf32>
    %67 = arith.addf %58, %66 : vector<8x128xf32>
    %cst_7 = arith.constant 3.000000e+00 : f32
    %68 = vector.broadcast %cst_7 : f32 to vector<8x1xf32>
    %69 = arith.cmpf oeq, %40, %68 : vector<8x1xf32>
    %70 = arith.extui %69 : vector<8x1xi1> to vector<8x1xi32>
    %71 = arith.sitofp %70 : vector<8x1xi32> to vector<8x1xf32>
    %72 = vector.extract_strided_slice %0 {offsets = [20, 0], sizes = [1, 128], strides = [1, 1]} : vector<24x128xf32> to vector<1x128xf32>
    %73 = vector.broadcast %71 : vector<8x1xf32> to vector<8x128xf32>
    %74 = vector.broadcast %72 : vector<1x128xf32> to vector<8x128xf32>
    %75 = arith.mulf %73, %74 : vector<8x128xf32>
    %76 = arith.addf %67, %75 : vector<8x128xf32>
    %cst_8 = arith.constant 4.000000e+00 : f32
    %77 = vector.broadcast %cst_8 : f32 to vector<8x1xf32>
    %78 = arith.cmpf oeq, %40, %77 : vector<8x1xf32>
    %79 = arith.extui %78 : vector<8x1xi1> to vector<8x1xi32>
    %80 = arith.sitofp %79 : vector<8x1xi32> to vector<8x1xf32>
    %81 = vector.extract_strided_slice %0 {offsets = [21, 0], sizes = [1, 128], strides = [1, 1]} : vector<24x128xf32> to vector<1x128xf32>
    %82 = vector.broadcast %80 : vector<8x1xf32> to vector<8x128xf32>
    %83 = vector.broadcast %81 : vector<1x128xf32> to vector<8x128xf32>
    %84 = arith.mulf %82, %83 : vector<8x128xf32>
    %85 = arith.addf %76, %84 : vector<8x128xf32>
    %86 = vector.extract_strided_slice %0 {offsets = [2, 0], sizes = [1, 128], strides = [1, 1]} : vector<24x128xf32> to vector<1x128xf32>
    %87 = vector.shape_cast %86 : vector<1x128xf32> to vector<1x128xf32>
    %88 = vector.broadcast %87 : vector<1x128xf32> to vector<16x128xf32>
    %89 = vector.extract_strided_slice %2 {offsets = [0, 0], sizes = [16, 1], strides = [1, 1]} : vector<16x8xf32> to vector<16x1xf32>
    %90 = vector.extract_strided_slice %0 {offsets = [3, 0], sizes = [1, 128], strides = [1, 1]} : vector<24x128xf32> to vector<1x128xf32>
    %91 = vector.broadcast %89 : vector<16x1xf32> to vector<16x128xf32>
    %92 = vector.broadcast %90 : vector<1x128xf32> to vector<16x128xf32>
    %93 = arith.mulf %91, %92 : vector<16x128xf32>
    %94 = arith.addf %88, %93 : vector<16x128xf32>
    %95 = vector.extract_strided_slice %2 {offsets = [0, 1], sizes = [16, 1], strides = [1, 1]} : vector<16x8xf32> to vector<16x1xf32>
    %96 = vector.extract_strided_slice %0 {offsets = [4, 0], sizes = [1, 128], strides = [1, 1]} : vector<24x128xf32> to vector<1x128xf32>
    %97 = vector.broadcast %95 : vector<16x1xf32> to vector<16x128xf32>
    %98 = vector.broadcast %96 : vector<1x128xf32> to vector<16x128xf32>
    %99 = arith.mulf %97, %98 : vector<16x128xf32>
    %100 = arith.addf %94, %99 : vector<16x128xf32>
    %101 = vector.extract_strided_slice %2 {offsets = [0, 2], sizes = [16, 1], strides = [1, 1]} : vector<16x8xf32> to vector<16x1xf32>
    %102 = vector.extract_strided_slice %0 {offsets = [5, 0], sizes = [1, 128], strides = [1, 1]} : vector<24x128xf32> to vector<1x128xf32>
    %103 = vector.broadcast %101 : vector<16x1xf32> to vector<16x128xf32>
    %104 = vector.broadcast %102 : vector<1x128xf32> to vector<16x128xf32>
    %105 = arith.mulf %103, %104 : vector<16x128xf32>
    %106 = arith.addf %100, %105 : vector<16x128xf32>
    %107 = vector.extract_strided_slice %2 {offsets = [0, 3], sizes = [16, 1], strides = [1, 1]} : vector<16x8xf32> to vector<16x1xf32>
    %cst_9 = arith.constant 0.000000e+00 : f32
    %108 = vector.broadcast %cst_9 : f32 to vector<16x1xf32>
    %109 = arith.cmpf oeq, %107, %108 : vector<16x1xf32>
    %110 = arith.extui %109 : vector<16x1xi1> to vector<16x1xi32>
    %111 = arith.sitofp %110 : vector<16x1xi32> to vector<16x1xf32>
    %112 = vector.extract_strided_slice %0 {offsets = [6, 0], sizes = [1, 128], strides = [1, 1]} : vector<24x128xf32> to vector<1x128xf32>
    %113 = vector.broadcast %111 : vector<16x1xf32> to vector<16x128xf32>
    %114 = vector.broadcast %112 : vector<1x128xf32> to vector<16x128xf32>
    %115 = arith.mulf %113, %114 : vector<16x128xf32>
    %116 = arith.addf %106, %115 : vector<16x128xf32>
    %cst_10 = arith.constant 1.000000e+00 : f32
    %117 = vector.broadcast %cst_10 : f32 to vector<16x1xf32>
    %118 = arith.cmpf oeq, %107, %117 : vector<16x1xf32>
    %119 = arith.extui %118 : vector<16x1xi1> to vector<16x1xi32>
    %120 = arith.sitofp %119 : vector<16x1xi32> to vector<16x1xf32>
    %121 = vector.extract_strided_slice %0 {offsets = [7, 0], sizes = [1, 128], strides = [1, 1]} : vector<24x128xf32> to vector<1x128xf32>
    %122 = vector.broadcast %120 : vector<16x1xf32> to vector<16x128xf32>
    %123 = vector.broadcast %121 : vector<1x128xf32> to vector<16x128xf32>
    %124 = arith.mulf %122, %123 : vector<16x128xf32>
    %125 = arith.addf %116, %124 : vector<16x128xf32>
    %cst_11 = arith.constant 2.000000e+00 : f32
    %126 = vector.broadcast %cst_11 : f32 to vector<16x1xf32>
    %127 = arith.cmpf oeq, %107, %126 : vector<16x1xf32>
    %128 = arith.extui %127 : vector<16x1xi1> to vector<16x1xi32>
    %129 = arith.sitofp %128 : vector<16x1xi32> to vector<16x1xf32>
    %130 = vector.extract_strided_slice %0 {offsets = [8, 0], sizes = [1, 128], strides = [1, 1]} : vector<24x128xf32> to vector<1x128xf32>
    %131 = vector.broadcast %129 : vector<16x1xf32> to vector<16x128xf32>
    %132 = vector.broadcast %130 : vector<1x128xf32> to vector<16x128xf32>
    %133 = arith.mulf %131, %132 : vector<16x128xf32>
    %134 = arith.addf %125, %133 : vector<16x128xf32>
    %cst_12 = arith.constant 3.000000e+00 : f32
    %135 = vector.broadcast %cst_12 : f32 to vector<16x1xf32>
    %136 = arith.cmpf oeq, %107, %135 : vector<16x1xf32>
    %137 = arith.extui %136 : vector<16x1xi1> to vector<16x1xi32>
    %138 = arith.sitofp %137 : vector<16x1xi32> to vector<16x1xf32>
    %139 = vector.extract_strided_slice %0 {offsets = [9, 0], sizes = [1, 128], strides = [1, 1]} : vector<24x128xf32> to vector<1x128xf32>
    %140 = vector.broadcast %138 : vector<16x1xf32> to vector<16x128xf32>
    %141 = vector.broadcast %139 : vector<1x128xf32> to vector<16x128xf32>
    %142 = arith.mulf %140, %141 : vector<16x128xf32>
    %143 = arith.addf %134, %142 : vector<16x128xf32>
    %cst_13 = arith.constant 4.000000e+00 : f32
    %144 = vector.broadcast %cst_13 : f32 to vector<16x1xf32>
    %145 = arith.cmpf oeq, %107, %144 : vector<16x1xf32>
    %146 = arith.extui %145 : vector<16x1xi1> to vector<16x1xi32>
    %147 = arith.sitofp %146 : vector<16x1xi32> to vector<16x1xf32>
    %148 = vector.extract_strided_slice %0 {offsets = [10, 0], sizes = [1, 128], strides = [1, 1]} : vector<24x128xf32> to vector<1x128xf32>
    %149 = vector.broadcast %147 : vector<16x1xf32> to vector<16x128xf32>
    %150 = vector.broadcast %148 : vector<1x128xf32> to vector<16x128xf32>
    %151 = arith.mulf %149, %150 : vector<16x128xf32>
    %152 = arith.addf %143, %151 : vector<16x128xf32>
    %cst_14 = arith.constant 5.000000e+00 : f32
    %153 = vector.broadcast %cst_14 : f32 to vector<16x1xf32>
    %154 = arith.cmpf oeq, %107, %153 : vector<16x1xf32>
    %155 = arith.extui %154 : vector<16x1xi1> to vector<16x1xi32>
    %156 = arith.sitofp %155 : vector<16x1xi32> to vector<16x1xf32>
    %157 = vector.extract_strided_slice %0 {offsets = [11, 0], sizes = [1, 128], strides = [1, 1]} : vector<24x128xf32> to vector<1x128xf32>
    %158 = vector.broadcast %156 : vector<16x1xf32> to vector<16x128xf32>
    %159 = vector.broadcast %157 : vector<1x128xf32> to vector<16x128xf32>
    %160 = arith.mulf %158, %159 : vector<16x128xf32>
    %161 = arith.addf %152, %160 : vector<16x128xf32>
    %162 = vector.extract_strided_slice %2 {offsets = [0, 4], sizes = [16, 1], strides = [1, 1]} : vector<16x8xf32> to vector<16x1xf32>
    %163 = vector.extract_strided_slice %11 {offsets = [0, 0], sizes = [1, 128], strides = [1, 1]} : vector<8x128xf32> to vector<1x128xf32>
    %164 = vector.shape_cast %163 : vector<1x128xf32> to vector<1x128xf32>
    %165 = vector.broadcast %164 : vector<1x128xf32> to vector<8x128xf32>
    %166 = vector.extract_strided_slice %161 {offsets = [0, 0], sizes = [8, 128], strides = [1, 1]} : vector<16x128xf32> to vector<8x128xf32>
    %167 = arith.addf %166, %165 : vector<8x128xf32>
    %168 = vector.extract_strided_slice %162 {offsets = [0, 0], sizes = [8, 1], strides = [1, 1]} : vector<16x1xf32> to vector<8x1xf32>
    %169 = vector.broadcast %168 : vector<8x1xf32> to vector<8x128xf32>
    %170 = arith.mulf %167, %169 : vector<8x128xf32>
    %c0_15 = arith.constant 0 : index
    %c0_16 = arith.constant 0 : index
    %171 = vector.load %arg3[%c0_15, %c0_16] : memref<24x128xf32, #tpu.memory_space<vmem>>, vector<8x128xf32>
    tpu.vector_store %arg3[%c0_15, %c0_16], %170 {strides = array<i32>} : memref<24x128xf32, #tpu.memory_space<vmem>>, vector<8x128xf32>,
    %172 = vector.extract_strided_slice %11 {offsets = [1, 0], sizes = [1, 128], strides = [1, 1]} : vector<8x128xf32> to vector<1x128xf32>
    %173 = vector.shape_cast %172 : vector<1x128xf32> to vector<1x128xf32>
    %174 = vector.broadcast %173 : vector<1x128xf32> to vector<8x128xf32>
    %175 = vector.extract_strided_slice %161 {offsets = [8, 0], sizes = [8, 128], strides = [1, 1]} : vector<16x128xf32> to vector<8x128xf32>
    %176 = arith.addf %175, %174 : vector<8x128xf32>
    %177 = vector.extract_strided_slice %162 {offsets = [8, 0], sizes = [8, 1], strides = [1, 1]} : vector<16x1xf32> to vector<8x1xf32>
    %178 = vector.broadcast %177 : vector<8x1xf32> to vector<8x128xf32>
    %179 = arith.mulf %176, %178 : vector<8x128xf32>
    %c8 = arith.constant 8 : index
    %c0_17 = arith.constant 0 : index
    %180 = vector.load %arg3[%c8, %c0_17] : memref<24x128xf32, #tpu.memory_space<vmem>>, vector<8x128xf32>
    tpu.vector_store %arg3[%c8, %c0_17], %179 {strides = array<i32>} : memref<24x128xf32, #tpu.memory_space<vmem>>, vector<8x128xf32>,
    %c16 = arith.constant 16 : index
    %c0_18 = arith.constant 0 : index
    %181 = vector.load %arg3[%c16, %c0_18] : memref<24x128xf32, #tpu.memory_space<vmem>>, vector<8x128xf32>
    tpu.vector_store %arg3[%c16, %c0_18], %85 {strides = array<i32>} : memref<24x128xf32, #tpu.memory_space<vmem>>, vector<8x128xf32>,
    return
  }
}

</mosaic_0001>

<bundles_post_ra>
// kernel: input_embeddings.1
= control target key start
LH: loop header
LB: loop body
LE: loop exit
PB: predicated region body
PF: predicated region fallthrough
CT: control target
= control target key end

     0   :  { %v578_v0 = vmov 0   ;;  %v579_v2 = vmov 2   ;;  %v580_v3 = vmov 0.0   ;;  %v581_v6 = vmov 3   ;;  %s848_s1 = inlined_call_operand.vmem [shape: f32[8,8], index: 1, kind: input, shape index: {}]   ;;  %s849_s0 = inlined_call_operand.vmem [shape: f32[16,8], index: 0, kind: input, shape index: {}]   ;;  %s850_s2 = inlined_call_operand.vmem [shape: f32[24,128], index: 2, kind: input, shape index: {}]   ;;  %s851_s3 = inlined_call_operand.vmem [shape: f32[24,128], index: 3, kind: output, shape index: {}]  }
   0x1   :  { %517 = vset.pattern.permute.xlu0 %v578_v0  ;;  %v17_v1 = vld [vmem:[%s848_s1] sm:$0xff]  ;;  %519 = vset.pattern.permute.xlu1 %v579_v2  ;;  %v582_v7 = vmov 1   ;;  %v583_v11 = vmov 4   ;;  %v584_v12 = vmov 5   ;;  %v627_v15 = vld [vmem:[%s849_s0 + $0x8] sm:$0xff]  ;;  %v25_v26 = vlaneseq  ;;  %v681_v44 = vld [vmem:[%s850_s2 + $0x10] sm:$0xff] }
   0x2   :  { %22 = vperm.xlu0 %517, %v17_v1   ;;  %155 = vperm.xlu1 %519, %v17_v1   ;;  %vm184_vm0 = vcmp.eq.f32.partialorder %v17_v1, 0.0  ;;  %vm198_vm1 = vcmp.eq.f32.partialorder %v17_v1, 1.0  ;;  %vm212_vm2 = vcmp.eq.f32.partialorder %v17_v1, 2.0  ;;  %vm226_vm3 = vcmp.eq.f32.partialorder %v17_v1, 3.0  ;;  %v622_v14 = vld [vmem:[%s849_s0] sm:$0xff]  ;;  %v662_v34 = vld [vmem:[%s850_s2 + $0x8] sm:$0xff] }
   0x3   :  { %v483_v4 = vsel %vm184_vm0, 1.0, %v580_v3  ;;  %v484_v5 = vsel %vm198_vm1, 1.0, %v580_v3  ;;  %v485_v9 = vsel %vm212_vm2, 1.0, %v580_v3  ;;  %v486_v10 = vsel %vm226_vm3, 1.0, %v580_v3  ;;  %v14_v47 = vld [vmem:[%s850_s2] sm:$0xff] }
   0x4   :  { %v523_v8 = vpack.i.bf16 %v484_v5, %v483_v4  ;;  %v529_v13 = vpack.i.bf16 %v486_v10, %v485_v9  ;;  %vm332_vm4 = vcmp.eq.f32.partialorder %v622_v14, 1.0  ;;  %vm333_vm5 = vcmp.eq.f32.partialorder %v627_v15, 1.0 }
   0x5   :  { %v490_v16 = vsel %vm332_vm4, 1.0, %v580_v3  ;;  %v491_v17 = vsel %vm333_vm5, 1.0, %v580_v3  ;;  %vm404_vm6 = vcmp.eq.f32.partialorder %v622_v14, 4.0  ;;  %vm405_vm7 = vcmp.eq.f32.partialorder %v627_v15, 4.0 }
   0x6   :  { %520 = vset.pattern.permute.xlu1 %v581_v6  ;;  %518 = vset.pattern.permute.xlu0 %v582_v7  ;;  %v546_v18 = vpack.i.bf16 %v491_v17, %v490_v16  ;;  %v496_v19 = vsel %vm404_vm6, 1.0, %v580_v3  ;;  %v497_v20 = vsel %vm405_vm7, 1.0, %v580_v3  ;;  %vm240_vm8 = vcmp.eq.f32.partialorder %v17_v1, 4.0 }
   0x7   :  { %165 = vperm.xlu1 %520, %v17_v1   ;;  %145 = vperm.xlu0 %518, %v17_v1   ;;  %v561_v21 = vpack.i.bf16 %v497_v20, %v496_v19  ;;  %vm308_vm9 = vcmp.eq.f32.partialorder %v622_v14, 0.0  ;;  %vm309_vm10 = vcmp.eq.f32.partialorder %v627_v15, 0.0  ;;  %v487_v22 = vsel %vm240_vm8, 1.0, %v580_v3 }
   0x8   :  { %v488_v23 = vsel %vm308_vm9, 1.0, %v580_v3  ;;  %v489_v24 = vsel %vm309_vm10, 1.0, %v580_v3  ;;  %vm356_vm11 = vcmp.eq.f32.partialorder %v622_v14, 2.0  ;;  %vm357_vm12 = vcmp.eq.f32.partialorder %v627_v15, 2.0 }
   0x9   :  { %v540_v25 = vpack.i.bf16 %v489_v24, %v488_v23  ;;  %v492_v27 = vsel %vm356_vm11, 1.0, %v580_v3  ;;  %v493_v28 = vsel %vm357_vm12, 1.0, %v580_v3  ;;  %vm380_vm13 = vcmp.eq.f32.partialorder %v622_v14, 3.0 }
   0xa   :  { %vm381_vm14 = vcmp.eq.f32.partialorder %v627_v15, 3.0  ;;  %v551_v29 = vpack.i.bf16 %v493_v28, %v492_v27  ;;  %v26_v30 = vshrl.u32 %v25_v26, 7  ;;  %v494_v31 = vsel %vm380_vm13, 1.0, %v580_v3 }
   0xb   :  { %521 = vset.pattern.permute.xlu1 %v583_v11  ;;  %522 = vset.pattern.permute.xlu0 %v584_v12  ;;  %v495_v32 = vsel %vm381_vm14, 1.0, %v580_v3  ;;  %vm428_vm15 = vcmp.eq.f32.partialorder %v622_v14, 5.0  ;;  %vm429_vm0 = vcmp.eq.f32.partialorder %v627_v15, 5.0  ;;  %v585_v24 = vmov 683565275  }
   0xc   :  { %175 = vperm.xlu1 %521, %v17_v1   ;;  %524 = vperm.xlu0 %522, %v523_v8   ;;  %v160_v33 = vsub.s32 6, %v26_v30  ;;  %v556_v35 = vpack.i.bf16 %v495_v32, %v494_v31  ;;  %v498_v37 = vsel %vm428_vm15, 1.0, %v580_v3  ;;  %v499_v38 = vsel %vm429_vm0, 1.0, %v580_v3 }
   0xd   :  { %v170_v39 = vsub.s32 7, %v26_v30  ;;  %v566_v40 = vpack.i.bf16 %v499_v38, %v498_v37  ;;  %v674_v42 = vsub.s32 4, %v26_v30  ;;  %v676_v43 = vsub.s32 3, %v26_v30 }
   0xe   :  { %v665_v36 = vrot.slane %v662_v34, %v160_v33  ;;  %v691_v48 = vsub.s32 2, %v26_v30  ;;  %v699_v51 = vsub.s32 5, %v26_v30  ;;  %v709_v55 = vrot.slane %v14_v47, %v160_v33 }
   0xf   :  { %v670_v41 = vrot.slane %v662_v34, %v170_v39  ;;  %v223_v45 = vrot.slane %v681_v44, %v676_v43  ;;  %v237_v46 = vrot.slane %v681_v44, %v674_v42  ;;  %v694_v49 = vrot.slane %v14_v47, %v676_v43 }
  0x10   :  { %528 = vset.pattern.permute.xlu1 %v584_v12  ;;  %535 = vset.pattern.permute.xlu0 %v578_v0  ;;  %v697_v50 = vrot.slane %v14_v47, %v691_v48  ;;  %v702_v52 = vrot.slane %v14_v47, %v674_v42  ;;  %v151_v53 = vrot.slane %v662_v34, %v699_v51  ;;  %v727_v62 = vsub.s32 0, %v26_v30 }
  0x11   :  { %530 = vperm.xlu1 %528, %v529_v13   ;;  %265 = vperm.xlu0 %535, %v627_v15   ;;  %v707_v54 = vrot.slane %v14_v47, %v699_v51  ;;  %v711_v56 = vrot.slane %v14_v47, %v170_v39  ;;  %v209_v57 = vrot.slane %v681_v44, %v691_v48  ;;  %v729_v63 = vsub.s32 1, %v26_v30 }
  0x12   :  { %v717_v58 = vrot.slane %v662_v34, %v691_v48  ;;  %v721_v59 = vrot.slane %v662_v34, %v676_v43  ;;  %v142_v60 = vrot.slane %v662_v34, %v674_v42  ;;  %v251_v61 = vrot.slane %v681_v44, %v699_v51 }
  0x13   :  { %v33_v1 = vrot.slane %v14_v47, %v729_v63  ;;  %v586_v26 = vmov 2475754826   ;;  %v587_v28 = vmov 2131351028   ;;  %v588_v33 = vmov 2102212464  }
  0x14   :  { %v589_v38 = vmov 920167782  }
  0x15   :  { %534 = vset.pattern.permute.xlu1 %v578_v0  ;;  %537 = vset.pattern.permute.xlu0 %v579_v2  ;;  %v28_v0 = vrot.slane %v14_v47, %v727_v62  ;;  %v590_v47 = vmov 1326507024  }
  0x16   :  { %260 = vperm.xlu1 %534, %v622_v14   ;;  %293 = vperm.xlu0 %537, %v622_v14  }
  0x1a   :  { %536 = vset.pattern.permute.xlu1 %v582_v7  ;;  %545 = vset.pattern.permute.xlu0 %v581_v6 }
  0x1b   :  { %277 = vperm.xlu1 %536, %v622_v14   ;;  %547 = vperm.xlu0 %545, %v546_v18  }
  0x1f   :  { %281 = vperm.xlu1 %536, %v627_v15   ;;  %562 = vperm.xlu0 %545, %v561_v21  }
  0x23   :  { %538 = vset.pattern.permute.xlu1 %v579_v2  ;;  %571 = vset.pattern.permute.xlu0 %v584_v12 }
  0x24   :  { %297 = vperm.xlu1 %538, %v627_v15   ;;  %245 = vperm.xlu0 %571, %v487_v22  }
  0x28   :  { %539 = vset.pattern.permute.xlu1 %v581_v6  ;;  %573 = vset.pattern.permute.xlu0 %v583_v11 }
  0x29   :  { %541 = vperm.xlu1 %539, %v540_v25  }
  0x2d   :  { %552 = vperm.xlu1 %539, %v551_v29  }
  0x31   :  { %557 = vperm.xlu1 %539, %v556_v35  }
  0x35   :  { %567 = vperm.xlu1 %539, %v566_v40  }
  0x39   :  { %572 = vset.pattern.permute.xlu1 %v583_v11 }
  0x3a   :  { %458 = vperm.xlu1 %572, %v622_v14  }
  0x3e   :  { %469 = vperm.xlu1 %572, %v627_v15  }
  0x81   :  { %v23_v2 = vpop.permute.xlu0 %22  ;;  %v733_v3 = vpop.permute.xlu1 %155 }
  0x82   :  { %v29_v4 = vmul.f32 %v28_v0, %v23_v2 }
  0x84   :  { %v735_v5 = vadd.f32 %v33_v1, %v29_v4 }
  0x86   :  { %v35_v6 = vand.u32 2147483647, %v735_v5  ;;  %v38_v7 = vand.u32 2139095040, %v735_v5  ;;  %v739_v8 = vpop.permute.xlu1 %165  ;;  %v741_v9 = vpop.permute.xlu0 %145  ;;  %vm37_vm8 = vcmp.lt.s32.totalorder %v735_v5, 0  ;;  %vm127_vm13 = vweird.f32 %v735_v5 }
  0x88   :  { %v39_v10 = vshrl.u32 %v38_v7, 23  ;;  %v42_v12 = vand.u32 8388607, %v35_v6  ;;  %vm36_vm9 = vcmp.le.f32.partialorder %v35_v6, 0.7853982 }
  0x8a   :  { %v479_v11 = vadd.s32 4294967169, %v39_v10  ;;  %v43_v16 = vor.u32 8388608, %v42_v12 }
  0x8b   :  { %v745_v13 = vpop.permute.xlu1 %175  ;;  %v747_v15 = vpop.permute.xlu0 %524 }
  0x8c   :  { %v45_v14 = vadd.s32 1, %v479_v11  ;;  %v751_v22 = vshll.u32 %v43_v16, 8 }
  0x8e   :  { %vm46_vm1 = vcmp.gt.s32.totalorder %v45_v14, 0 }
  0x8f   :  { %v47_v17 = vsel %vm46_vm1, %v45_v14, 0 }
  0x90   :  { %v49_v18 = vand.u32 31, %v47_v17  ;;  %v749_v19 = vpop.permute.xlu1 %530  ;;  %v48_v20 = vshrl.u32 %v47_v17, 5  ;;  %v266_v23 = vpop.permute.xlu0 %265 }
  0x91   :  { %v273_v30 = vmul.f32 %v694_v49, %v266_v23 }
  0x92   :  { %v50_v21 = vsub.s32 32, %v49_v18  ;;  %v52_v25 = vshll.u32 %v585_v24, %v49_v18  ;;  %v55_v27 = vshll.u32 %v586_v26, %v49_v18  ;;  %v58_v29 = vshll.u32 %v587_v28, %v49_v18 }
  0x93   :  { %v61_v37 = vshll.u32 %v588_v33, %v49_v18  ;;  %v64_v40 = vshll.u32 %v589_v38, %v49_v18  ;;  %vm67_vm2 = vcmp.lt.s32.totalorder %v48_v20, 1  ;;  %vm68_vm3 = vcmp.lt.s32.totalorder %v48_v20, 2 }
  0x94   :  { %v53_v31 = vshrl.u32 %v586_v26, %v50_v21  ;;  %v56_v32 = vshrl.u32 %v587_v28, %v50_v21  ;;  %v59_v35 = vshrl.u32 %v588_v33, %v50_v21  ;;  %v62_v39 = vshrl.u32 %v589_v38, %v50_v21 }
  0x95   :  { %v65_v0 = vshrl.u32 %v590_v47, %v50_v21  ;;  %v261_v1 = vpop.permute.xlu1 %260  ;;  %vm70_vm4 = vcmp.lt.s32.totalorder %v48_v20, 4  ;;  %v51_v14 = vshrl.u32 %v585_v24, %v50_v21  ;;  %vm69_vm5 = vcmp.lt.s32.totalorder %v48_v20, 3 }
  0x96   :  { %v54_v2 = vor.u32 %v53_v31, %v52_v25  ;;  %v57_v4 = vor.u32 %v56_v32, %v55_v27  ;;  %v60_v7 = vor.u32 %v59_v35, %v58_v29  ;;  %v63_v10 = vor.u32 %v62_v39, %v61_v37 }
  0x97   :  { %v66_v11 = vor.u32 %v65_v0, %v64_v40  ;;  %v272_v12 = vmul.f32 %v694_v49, %v261_v1  ;;  %v275_v32 = vadd.f32 %v273_v30, %v697_v50  ;;  %v294_v40 = vpop.permute.xlu0 %293 }
  0x98   :  { %v72_v16 = vsel %vm70_vm4, %v60_v7, 2102212464  ;;  %v75_v17 = vsel %vm67_vm2, %v54_v2, %v57_v4  ;;  %v79_v23 = vsel %vm67_vm2, %v57_v4, %v60_v7  ;;  %v76_v18 = vsel %vm70_vm4, %v63_v10, 920167782 }
  0x99   :  { %v80_v26 = vsel %vm70_vm4, %v66_v11, 1326507024  ;;  %v274_v28 = vadd.f32 %v272_v12, %v697_v50  ;;  %v71_v25 = vsel %vm67_vm2, %v51_v14, %v54_v2  ;;  %v77_v27 = vsel %vm69_vm5, %v60_v7, %v76_v18 }
  0x9a   :  { %v81_v29 = vsel %vm69_vm5, %v63_v10, %v80_v26  ;;  %v278_v31 = vpop.permute.xlu1 %277  ;;  %v73_v33 = vsel %vm69_vm5, %v57_v4, %v72_v16  ;;  %v78_v49 = vsel %vm68_vm3, %v75_v17, %v77_v27  ;;  %v304_v50 = vmul.f32 %v707_v54, %v294_v40 }
  0x9b   :  { %v82_v21 = vsel %vm68_vm3, %v79_v23, %v81_v29  ;;  %v288_v24 = vmul.f32 %v702_v52, %v278_v31  ;;  %v768_v38 = vmul.u32.u64.low %v751_v22, %v78_v49  ;;  %v769_v39 = vmul.u32.u64.high %v751_v22, %v78_v49, %v768_v38  ;;  %v548_v20 = vpop.permute.xlu0 %547 }
  0x9c   :  { %v764_v35 = vmul.u32.u64.low %v751_v22, %v82_v21  ;;  %v765_v37 = vmul.u32.u64.high %v751_v22, %v82_v21, %v764_v35  ;;  %v74_v30 = vsel %vm68_vm3, %v71_v25, %v73_v33  ;;  %v550_v18 = vunpack.i.h.bf16 %v548_v20 }
  0x9d   :  { %v290_v47 = vadd.f32 %v288_v24, %v274_v28  ;;  %v93_v4 = vadd.s32 1, %v769_v39  ;;  %v90_v7 = vmul.u32 %v751_v22, %v74_v30  ;;  %v549_v26 = vunpack.i.l.bf16 %v548_v20 }
  0x9e   :  { %v282_v0 = vpop.permute.xlu1 %281  ;;  %vm92_vm6 = vc.u32 %v765_v37, %v768_v38  ;;  %v353_v22 = vmul.f32 %v550_v18, %v711_v56  ;;  %v375_v49 = vrot.slane %v662_v34, %v727_v62 }
  0x9f   :  { %v289_v1 = vmul.f32 %v702_v52, %v282_v0  ;;  %v306_v2 = vadd.f32 %v304_v50, %v290_v47  ;;  %v94_v11 = vsel %vm92_vm6, %v93_v4, %v769_v39  ;;  %v563_v40 = vpop.permute.xlu0 %562  ;;  %v399_v4 = vrot.slane %v662_v34, %v729_v63 }
  0xa0   :  { %v95_v12 = vadd.s32 %v94_v11, %v90_v7  ;;  %v564_v11 = vunpack.i.l.bf16 %v563_v40  ;;  %v195_v34 = vrot.slane %v681_v44, %v729_v63 }
  0xa1   :  { %v291_v10 = vadd.f32 %v289_v1, %v275_v32 }
  0xa2   :  { %v96_v17 = vadd.s32 536870912, %v95_v12 }
  0xa3   :  { %v298_v14 = vpop.permute.xlu1 %297 }
  0xa4   :  { %v305_v16 = vmul.f32 %v707_v54, %v298_v14  ;;  %v781_v52 = vshrl.u32 %v96_v17, 30  ;;  %v352_v54 = vmul.f32 %v549_v26, %v711_v56  ;;  %v565_v56 = vunpack.i.h.bf16 %v563_v40 }
  0xa6   :  { %v307_v23 = vadd.f32 %v305_v16, %v291_v10  ;;  %v98_v25 = vshll.u32 %v781_v52, 30  ;;  %v425_v26 = vmul.f32 %v565_v56, %v717_v58 }
  0xa8   :  { %v542_v28 = vpop.permute.xlu1 %541  ;;  %v99_v31 = vsub.s32 %v95_v12, %v98_v25 }
  0xa9   :  { %v544_v27 = vunpack.i.h.bf16 %v542_v28  ;;  %v543_v29 = vunpack.i.l.bf16 %v542_v28  ;;  %v424_v28 = vmul.f32 %v564_v11, %v717_v58 }
  0xaa   :  { %v101_v24 = vsub.s32 0, %v99_v31 }
  0xab   :  { %v329_v32 = vmul.f32 %v544_v27, %v709_v55  ;;  %v328_v33 = vmul.f32 %v543_v29, %v709_v55 }
  0xac   :  { %v553_v21 = vpop.permute.xlu1 %552  ;;  %v480_v30 = vmin.u32 %v101_v24, %v99_v31 }
  0xad   :  { %v331_v35 = vadd.f32 %v329_v32, %v307_v23  ;;  %v330_v39 = vadd.f32 %v328_v33, %v306_v2  ;;  %v555_v47 = vunpack.i.h.bf16 %v553_v21  ;;  %v554_v50 = vunpack.i.l.bf16 %v553_v21 }
  0xae   :  { %v103_v12 = vclz %v480_v30 }
  0xaf   :  { %v354_v0 = vadd.f32 %v352_v54, %v330_v39  ;;  %v355_v1 = vadd.f32 %v353_v22, %v331_v35  ;;  %v377_v7 = vmul.f32 %v555_v47, %v375_v49  ;;  %v376_v55 = vmul.f32 %v554_v50, %v375_v49 }
  0xb0   :  { %v558_v10 = vpop.permute.xlu1 %557  ;;  %v481_v2 = vadd.s32 4294967294, %v103_v12  ;;  %v91_v54 = vadd.s32 %v768_v38, %v765_v37  ;;  %v121_v37 = vsub.s32 4, %v781_v52 }
  0xb1   :  { %v378_v14 = vadd.f32 %v376_v55, %v354_v0  ;;  %v379_v16 = vadd.f32 %v377_v7, %v355_v1  ;;  %v560_v20 = vunpack.i.h.bf16 %v558_v10  ;;  %v559_v17 = vunpack.i.l.bf16 %v558_v10 }
  0xb2   :  { %vm482_vm7 = vcmp.lt.s32.totalorder %v481_v2, 0 }
  0xb3   :  { %v401_v23 = vmul.f32 %v560_v20, %v399_v4  ;;  %v400_v18 = vmul.f32 %v559_v17, %v399_v4  ;;  %v106_v22 = vsel %vm482_vm7, 0, %v481_v2 }
  0xb4   :  { %v568_v25 = vpop.permute.xlu1 %567  ;;  %v107_v49 = vsub.s32 32, %v106_v22  ;;  %v111_v21 = vsub.s32 4294967266, %v106_v22  ;;  %v108_v47 = vshll.u32 %v99_v31, %v106_v22  ;;  %v122_v31 = vsel %vm37_vm8, %v121_v37, %v781_v52 }
  0xb5   :  { %v570_v27 = vunpack.i.h.bf16 %v568_v25  ;;  %v569_v29 = vunpack.i.l.bf16 %v568_v25  ;;  %v402_v32 = vadd.f32 %v400_v18, %v378_v14  ;;  %v403_v33 = vadd.f32 %v401_v23, %v379_v16 }
  0xb6   :  { %v109_v58 = vshrl.u32 %v91_v54, %v107_v49  ;;  %v112_v50 = vadd.s32 127, %v111_v21  ;;  %v124_v12 = vsel %vm36_vm9, 0, %v122_v31 }
  0xb7   :  { %v449_v24 = vmul.f32 %v570_v27, %v721_v59  ;;  %v426_v35 = vadd.f32 %v424_v28, %v402_v32  ;;  %v427_v39 = vadd.f32 %v425_v26, %v403_v33  ;;  %v448_v40 = vmul.f32 %v569_v29, %v721_v59 }
  0xb8   :  { %v110_v1 = vor.u32 %v109_v58, %v108_v47  ;;  %v113_v4 = vshll.u32 %v112_v50, 23  ;;  %v128_v14 = vadd.s32 3, %v124_v12  ;;  %v152_v27 = vmul.f32 %v151_v53, %v741_v9 }
  0xb9   :  { %v450_v30 = vadd.f32 %v448_v40, %v426_v35  ;;  %v451_v0 = vadd.f32 %v449_v24, %v427_v39  ;;  %v459_v18 = vpop.permute.xlu1 %458  ;;  %v181_v32 = vrot.slane %v681_v44, %v727_v62  ;;  %v526_v9 = vunpack.i.l.bf16 %v747_v15 }
  0xba   :  { %v114_v7 = vor.u32 4788187, %v113_v4  ;;  %v117_v10 = vcvt.s32.f32 %v110_v1  ;;  %v129_v16 = vand.u32 3, %v128_v14  ;;  %v527_v40 = vunpack.i.h.bf16 %v747_v15  ;;  %v246_v15 = vpop.permute.xlu0 %245 }
  0xbc   :  { %v115_v55 = vand.u32 2147483647, %v114_v7  ;;  %vm134_vm10 = vcmp.eq.s32.totalorder %v129_v16, 2  ;;  %vm131_vm11 = vcmp.eq.s32.totalorder %v129_v16, 0  ;;  %vm130_vm12 = vcmp.lt.s32.totalorder %v129_v16, 2 }
  0xbd   :  { %v470_v33 = vpop.permute.xlu1 %469 }
  0xbe   :  { %v118_v56 = vmul.f32 %v117_v10, %v115_v55 }
  0xc0   :  { %v119_v38 = vxor.u32 2147483648, %v118_v56 }
  0xc2   :  { %v120_v59 = vsel %vm37_vm8, %v119_v38, %v118_v56 }
  0xc3   :  { %v123_v11 = vsel %vm36_vm9, %v735_v5, %v120_v59  ;;  %v162_v5 = vmul.f32 %v665_v36, %v733_v3  ;;  %v532_v36 = vunpack.i.l.bf16 %v749_v19  ;;  %v533_v3 = vunpack.i.h.bf16 %v749_v19 }
  0xc4   :  { %574 = vcosq.f32 %v123_v11  ;;  %v252_v19 = vmul.f32 %v251_v61, %v246_v15 }
  0xc5   :  { %576 = vsinq.f32 %v123_v11  ;;  %v224_v47 = vmul.f32 %v532_v36, %v223_v45  ;;  %v238_v50 = vmul.f32 %v533_v3, %v237_v46 }
  0xce   :  { %v575_v20 = vpop.eup %574 }
  0xcf   :  { %v577_v17 = vpop.eup %576  ;;  %v135_v2 = vxor.u32 2147483648, %v575_v20 }
  0xd0   :  { %v132_v23 = vxor.u32 2147483648, %v577_v17 }
  0xd1   :  { %v136_v26 = vsel %vm134_vm10, %v135_v2, %v577_v17 }
  0xd2   :  { %v133_v6 = vsel %vm131_vm11, %v575_v20, %v132_v23 }
  0xd3   :  { %v137_v52 = vsel %vm130_vm12, %v133_v6, %v136_v26 }
  0xd4   :  { %v138_v28 = vsel %vm127_vm13, nan, %v137_v52 }
  0xd5   :  { %v143_v25 = vadd.f32 %v142_v60, %v138_v28  ;;  %v455_v29 = vrot.slane %v138_v28, %v727_v62  ;;  %v466_v22 = vrot.slane %v138_v28, %v729_v63  ;;  %v172_v60 = vmul.f32 %v670_v41, %v739_v8 }
  0xd6   :  { %v182_v62 = vmul.f32 %v181_v32, %v745_v13  ;;  %v196_v63 = vmul.f32 %v526_v9, %v195_v34  ;;  %v210_v8 = vmul.f32 %v527_v40, %v209_v57 }
  0xd7   :  { %v153_v54 = vadd.f32 %v152_v27, %v143_v25  ;;  %v456_v49 = vadd.f32 %v455_v29, %v450_v30  ;;  %v467_v21 = vadd.f32 %v466_v22, %v451_v0 }
  0xd9   :  { %v163_v53 = vadd.f32 %v162_v5, %v153_v54  ;;  %v461_v24 = vmul.f32 %v459_v18, %v456_v49  ;;  %v472_v35 = vmul.f32 %v470_v33, %v467_v21 }
  0xdb   :  { %v173_v39 = vadd.f32 %v172_v60, %v163_v53  ;;  %462 = vst [vmem:[%s851_s3] sm:$0xff] %v461_v24  ;;  %473 = vst [vmem:[%s851_s3 + $0x8] sm:$0xff] %v472_v35 }
  0xdd   :  { %v183_v41 = vadd.f32 %v182_v62, %v173_v39 }
  0xdf   :  { %v197_v13 = vadd.f32 %v196_v63, %v183_v41 }
  0xe1   :  { %v211_v58 = vadd.f32 %v210_v8, %v197_v13 }
  0xe3   :  { %v225_v30 = vadd.f32 %v224_v47, %v211_v58 }
  0xe5   :  { %v239_v0 = vadd.f32 %v238_v50, %v225_v30 }
  0xe7   :  { %v253_v1 = vadd.f32 %v252_v19, %v239_v0 }
  0xe9   :  { %474 = vst [vmem:[%s851_s3 + $0x10] sm:$0xff] %v253_v1 }

</bundles_post_ra>
